<compile_context>
chip_gen: v7x
topology: tpu7x:2x2x1
jax: 0.10.0
libtpu: 0.0.40
codegen_flags: <defaults>
</compile_context>

<pallas_src>
import math

import jax
import jax.numpy as jnp
from jax.experimental import pallas as pl
from jax.experimental.pallas import tpu as pltpu

NEG_SLOPE = 0.01   # nn.LeakyReLU default negative_slope
ROW = 8            # sublane alignment for the f32 input / f32 output rows


def _cdiv(a, b):
    return (a + b - 1) // b


def _round_up(a, b):
    return _cdiv(a, b) * b


def _leaky_relu(x):
    # For 0 < slope < 1: max(x, slope*x) == LeakyReLU(x).  One mul + one max.
    return jnp.maximum(x, NEG_SLOPE * x)


def _num_tensorcores():
    """Best-effort TensorCore count (v7x has 2); default 1 on any failure."""
    try:
        info = pltpu.get_tpu_info()
        for name in ("num_cores", "core_count", "num_tensorcores"):
            n = getattr(info, name, None)
            if isinstance(n, int) and n >= 1:
                return n
    except Exception:
        pass
    return 1


def mlp_kernel(x_ref, w0_ref, b0_ref, w1_ref, b1_ref, w2_ref, b2_ref, o_ref):
    """Fused forward for one batch tile; everything lives in VMEM.

    bf16 matmul operands, f32 accumulation / bias / activation.
    """
    x = x_ref[...].astype(jnp.bfloat16)                               # cast in-kernel

    h0 = jnp.dot(x, w0_ref[...], preferred_element_type=jnp.float32) + b0_ref[...]
    h0 = _leaky_relu(h0)

    h1 = jnp.dot(h0.astype(jnp.bfloat16), w1_ref[...],
                 preferred_element_type=jnp.float32) + b1_ref[...]
    h1 = _leaky_relu(h1)

    out = jnp.dot(h1.astype(jnp.bfloat16), w2_ref[...],
                  preferred_element_type=jnp.float32) + b2_ref[...]
    o_ref[...] = out.astype(o_ref.dtype)


def prepare_params(params):
    """One-time hoist: bf16 weights (in, out) and (1, out) f32 biases."""
    prepared = []
    for w, b in params:
        prepared.append((w.astype(jnp.bfloat16),
                         b.reshape(1, -1).astype(jnp.float32)))
    return tuple(prepared)


def dnn_forward(x, prepared_params, *, batch_tile=8192, out_dtype=jnp.float32):
    """x: (B, input_size) float32.  prepared_params: output of prepare_params."""
    (w0, b0), (w1, b1), (w2, b2) = prepared_params
    B, in_size = x.shape
    out_size = w2.shape[1]

    # --- batch tiling ----------------------------------------------------------
    # Biggest tile that fits the budget; no forced splits on single-TC chips.
    tile = _round_up(min(batch_tile, _round_up(B, ROW)), ROW)
    n_steps = _cdiv(B, tile)

    cores = _num_tensorcores()
    if cores > 1 and n_steps > 1 and n_steps % cores != 0:
        # Keep both v7x TensorCores evenly loaded.
        target = _round_up(n_steps, cores)
        tile = _round_up(_cdiv(B, target), ROW)
        n_steps = _cdiv(B, tile)

    B_pad = n_steps * tile
    if B_pad != B:
        x = jnp.pad(x, ((0, B_pad - B), (0, 0)))   # zero rows; sliced off at the end

    def full(arr):
        # Whole array, replicated across the batch grid.
        return pl.BlockSpec(arr.shape, lambda i: (0, 0))

    out = pl.pallas_call(
        mlp_kernel,
        out_shape=jax.ShapeDtypeStruct((B_pad, out_size), out_dtype),
        grid=(n_steps,),
        in_specs=[
            pl.BlockSpec((tile, in_size), lambda i: (i, 0)),
            full(w0), full(b0),
            full(w1), full(b1),
            full(w2), full(b2),
        ],
        out_specs=pl.BlockSpec((tile, out_size), lambda i: (i, 0)),
        compiler_params=pltpu.CompilerParams(
            dimension_semantics=("parallel",),
            vmem_limit_bytes=32 * 1024 * 1024,   # safe on v5e/v6e/v7x; >> kernel needs
        ),
    )(x, w0, b0, w1, b1, w2, b2)

    if B_pad != B:
        out = out[:B]
    return out


def init_params(key, layer_sizes):
    """Deterministic PyTorch-style Linear init: U(-1/sqrt(in), 1/sqrt(in))."""
    params = []
    for in_size, out_size in zip(layer_sizes[:-1], layer_sizes[1:]):
        key, kw, kb = jax.random.split(key, 3)
        bound = 1.0 / math.sqrt(in_size)
        w = jax.random.uniform(kw, (in_size, out_size), jnp.float32,
                               minval=-bound, maxval=bound)
        b = jax.random.uniform(kb, (out_size,), jnp.float32,
                               minval=-bound, maxval=bound)
        params.append((w, b))
    return params


def dnn_reference(x, params):
    """Pure-JAX f32 reference of the PyTorch forward (eval mode)."""
    n = len(params)
    h = x
    for i, (w, b) in enumerate(params):
        h = h @ w + b
        if i < n - 1:
            h = _leaky_relu(h)   # dropout is identity in eval mode
    return h


if __name__ == "__main__":
    # DNN(input_size=32, outputs_size=16, hidden_layers=[64, 64], dropout_rate=0.2)
    input_size, outputs_size = 32, 16
    hidden_layers = [64, 64]

    key = jax.random.PRNGKey(0)
    key, kp = jax.random.split(key)
    params = init_params(kp, [input_size, *hidden_layers, outputs_size])
    prepared = prepare_params(params)

    # batch=8 -> sublane-aligned (no padding, no slice); batch=5 -> pad + slice path.
    for batch in (8, 5):
        key, kx = jax.random.split(key)
        x = jax.random.normal(kx, (batch, input_size), jnp.float32)

        out = jax.block_until_ready(dnn_forward(x, prepared))
        ref = dnn_reference(x, params)

        assert out.shape == (batch, outputs_size), out.shape
        # bf16 matmul operands (f32 accumulation) -> loose-ish tolerance vs f32 ref.
        assert jnp.allclose(out, ref, atol=5e-2, rtol=5e-2), (
            "mismatch vs reference (batch=%d), max abs err = %g"
            % (batch, float(jnp.max(jnp.abs(out - ref)))))

    print("KERNEL_OK")
</pallas_src>

<mosaic_0001>
module attributes {stable_mosaic.version = 11 : i64} {
  func.func @mlp_kernel(%arg0: i32, %arg1: memref<8x32xf32, #tpu.memory_space<vmem>>, %arg2: memref<32x64xbf16, #tpu.memory_space<vmem>>, %arg3: memref<1x64xf32, #tpu.memory_space<vmem>>, %arg4: memref<64x64xbf16, #tpu.memory_space<vmem>>, %arg5: memref<1x64xf32, #tpu.memory_space<vmem>>, %arg6: memref<64x16xbf16, #tpu.memory_space<vmem>>, %arg7: memref<1x16xf32, #tpu.memory_space<vmem>>, %arg8: memref<8x16xf32, #tpu.memory_space<vmem>>) attributes {dimension_semantics = [#tpu.dimension_semantics<parallel>], iteration_bounds = array<i64: 1>, scalar_prefetch = 0 : i64, scratch_operands = 0 : i64, tpu.core_type = #tpu.core_type<tc>, window_params = [{transform_indices = @transform_0, window_bounds = array<i64: 8, 32>}, {pipeline_mode = #tpu.pipeline_mode<synchronous>, transform_indices = @transform_1, window_bounds = array<i64: 32, 64>}, {pipeline_mode = #tpu.pipeline_mode<synchronous>, transform_indices = @transform_2, window_bounds = array<i64: 1, 64>}, {pipeline_mode = #tpu.pipeline_mode<synchronous>, transform_indices = @transform_3, window_bounds = array<i64: 64, 64>}, {pipeline_mode = #tpu.pipeline_mode<synchronous>, transform_indices = @transform_4, window_bounds = array<i64: 1, 64>}, {pipeline_mode = #tpu.pipeline_mode<synchronous>, transform_indices = @transform_5, window_bounds = array<i64: 64, 16>}, {pipeline_mode = #tpu.pipeline_mode<synchronous>, transform_indices = @transform_6, window_bounds = array<i64: 1, 16>}, {transform_indices = @transform_7, window_bounds = array<i64: 8, 16>}]} {
    %c0 = arith.constant 0 : index
    %c0_0 = arith.constant 0 : index
    %0 = vector.load %arg1[%c0, %c0_0] : memref<8x32xf32, #tpu.memory_space<vmem>>, vector<8x32xf32>
    %1 = arith.truncf %0 : vector<8x32xf32> to vector<8x32xbf16>
    %c0_1 = arith.constant 0 : index
    %c0_2 = arith.constant 0 : index
    %2 = vector.load %arg2[%c0_1, %c0_2] : memref<32x64xbf16, #tpu.memory_space<vmem>>, vector<32x64xbf16>
    %cst = arith.constant dense<0.000000e+00> : vector<8x64xf32>
    %3 = tpu.matmul %1, %2, %cst {dimension_numbers = #tpu.dot_dimension_numbers<[1], [0], [0], [1], [0, 0, 1, 1], [], []>} : vector<8x32xbf16>, vector<32x64xbf16>, vector<8x64xf32> -> vector<8x64xf32>
    %c0_3 = arith.constant 0 : index
    %c0_4 = arith.constant 0 : index
    %4 = vector.load %arg3[%c0_3, %c0_4] : memref<1x64xf32, #tpu.memory_space<vmem>>, vector<1x64xf32>
    %5 = vector.broadcast %4 : vector<1x64xf32> to vector<8x64xf32>
    %6 = arith.addf %3, %5 : vector<8x64xf32>
    %cst_5 = arith.constant 0.00999999977 : f32
    %7 = vector.broadcast %cst_5 : f32 to vector<8x64xf32>
    %8 = arith.mulf %7, %6 : vector<8x64xf32>
    %9 = arith.maximumf %6, %8 : vector<8x64xf32>
    %10 = arith.truncf %9 : vector<8x64xf32> to vector<8x64xbf16>
    %c0_6 = arith.constant 0 : index
    %c0_7 = arith.constant 0 : index
    %11 = vector.load %arg4[%c0_6, %c0_7] : memref<64x64xbf16, #tpu.memory_space<vmem>>, vector<64x64xbf16>
    %cst_8 = arith.constant dense<0.000000e+00> : vector<8x64xf32>
    %12 = tpu.matmul %10, %11, %cst_8 {dimension_numbers = #tpu.dot_dimension_numbers<[1], [0], [0], [1], [0, 0, 1, 1], [], []>} : vector<8x64xbf16>, vector<64x64xbf16>, vector<8x64xf32> -> vector<8x64xf32>
    %c0_9 = arith.constant 0 : index
    %c0_10 = arith.constant 0 : index
    %13 = vector.load %arg5[%c0_9, %c0_10] : memref<1x64xf32, #tpu.memory_space<vmem>>, vector<1x64xf32>
    %14 = vector.broadcast %13 : vector<1x64xf32> to vector<8x64xf32>
    %15 = arith.addf %12, %14 : vector<8x64xf32>
    %cst_11 = arith.constant 0.00999999977 : f32
    %16 = vector.broadcast %cst_11 : f32 to vector<8x64xf32>
    %17 = arith.mulf %16, %15 : vector<8x64xf32>
    %18 = arith.maximumf %15, %17 : vector<8x64xf32>
    %19 = arith.truncf %18 : vector<8x64xf32> to vector<8x64xbf16>
    %c0_12 = arith.constant 0 : index
    %c0_13 = arith.constant 0 : index
    %20 = vector.load %arg6[%c0_12, %c0_13] : memref<64x16xbf16, #tpu.memory_space<vmem>>, vector<64x16xbf16>
    %cst_14 = arith.constant dense<0.000000e+00> : vector<8x16xf32>
    %21 = tpu.matmul %19, %20, %cst_14 {dimension_numbers = #tpu.dot_dimension_numbers<[1], [0], [0], [1], [0, 0, 1, 1], [], []>} : vector<8x64xbf16>, vector<64x16xbf16>, vector<8x16xf32> -> vector<8x16xf32>
    %c0_15 = arith.constant 0 : index
    %c0_16 = arith.constant 0 : index
    %22 = vector.load %arg7[%c0_15, %c0_16] : memref<1x16xf32, #tpu.memory_space<vmem>>, vector<1x16xf32>
    %23 = vector.broadcast %22 : vector<1x16xf32> to vector<8x16xf32>
    %24 = arith.addf %21, %23 : vector<8x16xf32>
    %c0_17 = arith.constant 0 : index
    %c0_18 = arith.constant 0 : index
    %25 = vector.load %arg8[%c0_17, %c0_18] : memref<8x16xf32, #tpu.memory_space<vmem>>, vector<8x16xf32>
    tpu.vector_store %arg8[%c0_17, %c0_18], %24 {strides = array<i32>} : memref<8x16xf32, #tpu.memory_space<vmem>>, vector<8x16xf32>,
    return
  }
  func.func @transform_0(%arg0: i32) -> (i32, i32) {
    %c0_i32 = arith.constant 0 : i32
    %c0_i32_0 = arith.constant 0 : i32
    return %arg0, %c0_i32 : i32, i32
  }
  func.func @transform_1(%arg0: i32) -> (i32, i32) {
    %c0_i32 = arith.constant 0 : i32
    %c0_i32_0 = arith.constant 0 : i32
    %c0_i32_1 = arith.constant 0 : i32
    return %c0_i32, %c0_i32_0 : i32, i32
  }
  func.func @transform_2(%arg0: i32) -> (i32, i32) {
    %c0_i32 = arith.constant 0 : i32
    %c0_i32_0 = arith.constant 0 : i32
    %c0_i32_1 = arith.constant 0 : i32
    return %c0_i32, %c0_i32_0 : i32, i32
  }
  func.func @transform_3(%arg0: i32) -> (i32, i32) {
    %c0_i32 = arith.constant 0 : i32
    %c0_i32_0 = arith.constant 0 : i32
    %c0_i32_1 = arith.constant 0 : i32
    return %c0_i32, %c0_i32_0 : i32, i32
  }
  func.func @transform_4(%arg0: i32) -> (i32, i32) {
    %c0_i32 = arith.constant 0 : i32
    %c0_i32_0 = arith.constant 0 : i32
    %c0_i32_1 = arith.constant 0 : i32
    return %c0_i32, %c0_i32_0 : i32, i32
  }
  func.func @transform_5(%arg0: i32) -> (i32, i32) {
    %c0_i32 = arith.constant 0 : i32
    %c0_i32_0 = arith.constant 0 : i32
    %c0_i32_1 = arith.constant 0 : i32
    return %c0_i32, %c0_i32_0 : i32, i32
  }
  func.func @transform_6(%arg0: i32) -> (i32, i32) {
    %c0_i32 = arith.constant 0 : i32
    %c0_i32_0 = arith.constant 0 : i32
    %c0_i32_1 = arith.constant 0 : i32
    return %c0_i32, %c0_i32_0 : i32, i32
  }
  func.func @transform_7(%arg0: i32) -> (i32, i32) {
    %c0_i32 = arith.constant 0 : i32
    %c0_i32_0 = arith.constant 0 : i32
    return %arg0, %c0_i32 : i32, i32
  }
}

</mosaic_0001>

<bundles_post_ra>
// kernel: tpu_custom_call.1
= control target key start
LH: loop header
LB: loop body
LE: loop exit
PB: predicated region body
PF: predicated region fallthrough
CT: control target
= control target key end

     0   :  { %12 = vsyncpa [#allocation3], 0  ;;  %s532_s0 = inlined_call_operand.hbm [shape: f32[8,32], index: 0, kind: input, shape index: {}]   ;;  %s533_s1 = inlined_call_operand.vmem [shape: bf16[32,64], index: 1, kind: input, shape index: {}]   ;;  %s534_s2 = inlined_call_operand.vmem [shape: f32[1,64], index: 2, kind: input, shape index: {}]   ;;  %s535_s3 = inlined_call_operand.vmem [shape: bf16[64,64], index: 3, kind: input, shape index: {}]   ;;  %s536_s4 = inlined_call_operand.vmem [shape: f32[1,64], index: 4, kind: input, shape index: {}]   ;;  %s537_s5 = inlined_call_operand.vmem [shape: bf16[64,16], index: 5, kind: input, shape index: {}]   ;;  %s538_s6 = inlined_call_operand.vmem [shape: f32[1,16], index: 6, kind: input, shape index: {}]   ;;  %s539_s7 = inlined_call_operand.hbm [shape: f32[8,16], index: 7, kind: output, shape index: {}]  }
   0x1   :  { %13 = vsyncpa [#allocation4], 0  ;;  %s420_s24 = smov [#allocation2]   ;;  %s372_s28 = scalar_lea.hbm %s532_s0, 128 }
   0x2   :  { %s20_s25 = sshll.u32 %s420_s24, 4  ;;  %p373_p0 = scmp.ne.s32.totalorder %s532_s0, %s372_s28  ;;  %s21_s25 = int_to_ptr.vmem [resolvable:$true] %s20_s25 }
   0x3   :  { %p376_p1 = scmp.lt.u32.totalorder %s372_s28, %s532_s0 }
   0x5   :  { %p378_p2 = pnand %p376_p1, %p373_p0 }
   0x7   :  { %381 = shalt.err (!%p378_p2)
}
   0x8   :  { %s382_s10 = scalar_lea.vmem %s21_s25, 128  ;;  %p387_p4 = scmp.lt.s32.totalorder %s21_s25, %s21_s25 }
   0x9   :  { %p383_p3 = scmp.ne.s32.totalorder %s21_s25, %s382_s10  ;;  %p388_p5 = scmp.lt.s32.totalorder %s382_s10, %s382_s10 }
   0xb   :  { %p389_p6 = por %p388_p5, %p387_p4 }
   0xd   :  { %p390_p7 = pnand %p389_p6, %p383_p3 }
   0xf   :  { %393 = shalt.err (!%p390_p7)
}
  0x10   :  { %23 = dma.hbm_to_vmem [thread:$0]  %s532_s0, 128, %s21_s25, [#allocation3]  }
  0x11   :  { %416 = dma.done.wait [#allocation3], 128  }
  0x12   :  { %417 = vsyncadd [#allocation3], 4294967168  ;;  %v421_v0 = vmov 0.0   ;;  %vm422_vm0 = vmmov 0   ;;  %v362_v1 = vld [vmem:[%s533_s1] sm:$0xff]   ;;  %v363_v2 = vld [vmem:[%s533_s1 + $0x8] sm:$0xff]  }
  0x13   :  { %326 = vmatprep.subr.bf16.mxu0 %v421_v0  ;;  %330 = vmatprep.mubr.msk.bf16.mxu0 %vm422_vm0, %v421_v0  ;;  %v40_v3 = vld [vmem:[#allocation2] sm:$0xff]  ;;  %vm65_vm1 = vcmask 261120   ;;  %v365_v5 = vld [vmem:[%s535_s3 + $0x8] sm:$0xff]   ;;  %v366_v7 = vld [vmem:[%s535_s3 + $0x10] sm:$0xff]   ;;  %vm151_vm2 = vcmask 523264   ;;  %vm280_vm3 = vcmask 130048  }
  0x14   :  { %334 = vmatprep.subr.bf16.mxu1 %v421_v0  ;;  %342 = vmatprep.mubr.msk.bf16.mxu1 %vm422_vm0, %v421_v0  ;;  %v364_v4 = vld [vmem:[%s535_s3] sm:$0xff]   ;;  %v41_v6 = vpack.c.bf16 %v40_v3, %v40_v3  ;;  %v367_v8 = vld [vmem:[%s535_s3 + $0x18] sm:$0xff]   ;;  %v369_v10 = vld [vmem:[%s537_s5 + $0x8] sm:$0xff]  }
  0x15   :  { %327 = vmatpush3.bf16.msra.mxu0 %v362_v1  ;;  %335 = vmatpush3.bf16.msra.mxu1 %v364_v4  ;;  %v368_v9 = vld [vmem:[%s537_s5] sm:$0xff]   ;;  %v370_v20 = vld [vmem:[%s537_s5 + $0x10] sm:$0xff]   ;;  %v371_v21 = vld [vmem:[%s537_s5 + $0x18] sm:$0xff]   ;;  %s423_s5 = smov [#allocation5]  }
  0x16   :  { %328 = vmatprep.subr.bf16.mxu0 %v421_v0  ;;  %336 = vmatprep.subr.bf16.mxu1 %v421_v0  ;;  %v297_v11 = vld [vmem:[%s534_s2] ss:$0 sm:$0xff]  ;;  %s288_s12 = sshll.u32 %s423_s5, 4  ;;  %s289_s12 = int_to_ptr.vmem [resolvable:$true] %s288_s12 }
  0x17   :  { %v301_v22 = vld [vmem:[%s536_s4] ss:$0 sm:$0xff]  ;;  %s394_s4 = scalar_lea.vmem %s289_s12, 128  ;;  %p399_p9 = scmp.lt.s32.totalorder %s289_s12, %s289_s12 }
  0x18   :  { %v307_v31 = vld [vmem:[%s538_s6] ss:$0 sm:$0xff]  ;;  %p395_p8 = scmp.ne.s32.totalorder %s289_s12, %s394_s4  ;;  %p400_p10 = scmp.lt.s32.totalorder %s394_s4, %s394_s4 }
  0x19   :  { %329 = vmatpush3.bf16.msra.mxu0 %v363_v2  ;;  %337 = vmatpush3.bf16.msra.mxu1 %v365_v5 }
  0x1a   :  { %346 = vmatprep.subr.bf16.mxu0 %v421_v0  ;;  %338 = vmatprep.subr.bf16.mxu1 %v421_v0  ;;  %p401_p11 = por %p400_p10, %p399_p9 }
  0x1c   :  { %331 = vmatmul.mubr.msk.bf16.vlgmr.msra.gmra.mrb[0].mxu0 %vm65_vm1, %v41_v6  ;;  %p402_p12 = pnand %p401_p11, %p395_p8 }
  0x1d   :  { %354 = vmatprep.mubr.msk.bf16.mxu0 %vm422_vm0, %v421_v0  ;;  %339 = vmatpush3.bf16.msra.mxu1 %v366_v7 }
  0x1e   :  { %340 = vmatprep.subr.bf16.mxu1 %v421_v0  ;;  %347 = vmatpush3.bf16.msra.mxu0 %v368_v9 }
  0x1f   :  { %348 = vmatprep.subr.bf16.mxu0 %v421_v0 }
  0x21   :  { %341 = vmatpush3.bf16.msra.mxu1 %v367_v8 }
  0x22   :  { %349 = vmatpush3.bf16.msra.mxu0 %v369_v10 }
  0x23   :  { %350 = vmatprep.subr.bf16.mxu0 %v421_v0 }
  0x26   :  { %351 = vmatpush3.bf16.msra.mxu0 %v370_v20 }
  0x27   :  { %352 = vmatprep.subr.bf16.mxu0 %v421_v0 }
  0x2a   :  { %353 = vmatpush3.bf16.msra.mxu0 %v371_v21 }
  0xef   :  { %v103_v12 = vpop.f32.mrb[0].mxu0 }
  0xf0   :  { %v104_v13 = vadd.f32 %v297_v11, %v103_v12  ;;  %v332_v14 = vpop.f32.mrb[1].mxu0 }
  0xf1   :  { %v106_v15 = vpop.f32.mrb[2].mxu0 }
  0xf2   :  { %v109_v16 = vmul.f32 0.01, %v104_v13  ;;  %v333_v17 = vpop.f32.mrb[3].mxu0 }
  0xf4   :  { %v110_v18 = vmax.f32 %v104_v13, %v109_v16 }
  0xf6   :  { %v111_v19 = vpack.c.bf16 %v110_v18, %v110_v18 }
  0xf8   :  { %343 = vmatmul.mubr.msk.bf16.vlgmr.msra.gmra.mrb[0].mxu1 %vm151_vm2, %v111_v19 }
 0x1cb   :  { %v189_v23 = vpop.f32.mrb[0].mxu1 }
 0x1cc   :  { %v190_v24 = vadd.f32 %v301_v22, %v189_v23  ;;  %v344_v25 = vpop.f32.mrb[1].mxu1 }
 0x1cd   :  { %v192_v26 = vpop.f32.mrb[2].mxu1 }
 0x1ce   :  { %v195_v27 = vmul.f32 0.01, %v190_v24  ;;  %v345_v28 = vpop.f32.mrb[3].mxu1 }
 0x1d0   :  { %v196_v29 = vmax.f32 %v190_v24, %v195_v27 }
 0x1d2   :  { %v197_v30 = vpack.c.bf16 %v196_v29, %v196_v29 }
 0x1d4   :  { %355 = vmatmul.mubr.msk.bf16.vlgmr.msra.gmra.mrb[4].mxu0 %vm151_vm2, %v197_v30 }
 0x2a7   :  { %v274_v32 = vpop.f32.mrb[4].mxu0 }
 0x2a8   :  { %v275_v33 = vadd.f32 %v307_v31, %v274_v32  ;;  %v356_v34 = vpop.f32.mrb[5].mxu0 }
 0x2a9   :  { %v277_v35 = vpop.f32.mrb[6].mxu0 }
 0x2aa   :  { %v357_v36 = vpop.f32.mrb[7].mxu0  ;;  %281 = vst.msk [vmem:[#allocation5] sm:$0xff] %vm280_vm3, %v275_v33 }
 0x2ab   :  { %405 = shalt.err (!%p402_p12)
}
 0x2ac   :  { %s406_s6 = scalar_lea.hbm %s539_s7, 128 }
 0x2ad   :  { %p407_p13 = scmp.ne.s32.totalorder %s539_s7, %s406_s6  ;;  %p410_p0 = scmp.lt.u32.totalorder %s406_s6, %s539_s7 }
 0x2af   :  { %p412_p1 = pnand %p410_p0, %p407_p13 }
 0x2b1   :  { %415 = shalt.err (!%p412_p1)
}
 0x2b2   :  { %291 = dma.vmem_to_hbm [thread:$0]  %s289_s12, 128, %s539_s7, [#allocation4]  }
 0x2b3   :  { %418 = dma.done.wait [#allocation4], 128  }
 0x2b4   :  { %419 = vsyncadd [#allocation4], 4294967168 }
 0x2b5   :  { %295 = vsyncpa [#allocation3], 1 }
 0x2b6   :  { %296 = vsyncpa [#allocation4], 1 }

</bundles_post_ra>
